<compile_context>
chip_gen: v7x
topology: tpu7x:2x2x1
jax: 0.10.0
libtpu: 0.0.40
codegen_flags: <defaults>
</compile_context>

<pallas_src>
import jax
import jax.numpy as jnp
from jax.experimental import pallas as pl
from jax.experimental.pallas import tpu as pltpu


def soft_attention_kernel(feats_ref, h_ref, wv_ref, wa_ref, att_ref, alpha_ref):
    # feats_ref: (TB, N, F)   h_ref: (TB, A)  (= key@wh + bh + bv, biases folded)
    # wv_ref:    (F, A)       wa_ref: (1, A)
    # att_ref:   (TB, F)      alpha_ref: (TB, N)
    tb, n, f = feats_ref.shape
    a = wv_ref.shape[-1]

    feats = feats_ref[...]                                   # (TB, N, F)

    # v = wv(feats): flatten batch*feat_num so the MXU sees one tall matmul.
    v = jnp.dot(feats.reshape(tb * n, f), wv_ref[...],
                preferred_element_type=jnp.float32).reshape(tb, n, a)
    inputs = v + h_ref[...][:, None, :]                      # (TB, N, A)

    # scores = wa(tanh(inputs)): output width 1 -> do it as a VPU mul + lane
    # reduce so scores land as (TB, N) with feat_num on the lane axis.
    scores = jnp.sum(jnp.tanh(inputs) * wa_ref[...][None, :, :], axis=-1)  # (TB, N)

    # Softmax over feat_num (last axis, lane-resident).
    m = jnp.max(scores, axis=-1, keepdims=True)              # (TB, 1)
    e = jnp.exp(scores - m)                                  # (TB, N)
    denom = jnp.sum(e, axis=-1, keepdims=True)               # (TB, 1)
    alpha = e * pl.reciprocal(denom, approx=False)           # exact, keeps 1e-5 tol

    # att_feats = alpha @ feats per batch row.
    if n >= 128:
        # Large feat_num: single batched MXU contraction.
        att = jnp.einsum("bn,bnf->bf", alpha, feats,
                         preferred_element_type=jnp.float32)
    else:
        # Small feat_num: broadcast-mul + sublane reduce beats a degenerate
        # M=1 batched matmul.
        att = jnp.sum(alpha[:, :, None] * feats, axis=1)     # (TB, F)

    att_ref[...] = att
    alpha_ref[...] = alpha


def soft_attention(feats, key, wh, bh, wv, bv, wa):
    """feats: (B, N, F), key: (B, H); linear weights stored as (in, out)."""
    B, N, F = feats.shape
    A = wh.shape[-1]

    # Fold the key projection and BOTH biases into a single per-batch vector:
    # inputs = feats@wv + (key@wh + bh + bv). Trivial for XLA, shrinks the kernel.
    h = (key @ wh + bh + bv).astype(jnp.float32)             # (B, A)
    wa_row = wa.reshape(1, A).astype(jnp.float32)             # lane-vector form

    # Batch tile: multiple of 8 (sublane rule). Cap so the double-buffered
    # feats tile stays small relative to scoped VMEM on all generations.
    feats_row_bytes = max(N * F * 4, 1)
    tb_vmem_cap = max(8, ((4 * 1024 * 1024) // feats_row_bytes) // 8 * 8)
    tb = min(256, tb_vmem_cap, ((B + 7) // 8) * 8)
    Bp = ((B + tb - 1) // tb) * tb
    if Bp != B:
        pad = Bp - B
        feats_p = jnp.pad(feats, ((0, pad), (0, 0), (0, 0)))
        h_p = jnp.pad(h, ((0, pad), (0, 0)))
    else:
        feats_p, h_p = feats, h

    att, alpha = pl.pallas_call(
        soft_attention_kernel,
        out_shape=(
            jax.ShapeDtypeStruct((Bp, F), jnp.float32),
            jax.ShapeDtypeStruct((Bp, N), jnp.float32),
        ),
        grid_spec=pltpu.PrefetchScalarGridSpec(
            num_scalar_prefetch=0,
            grid=(Bp // tb,),
            in_specs=[
                pl.BlockSpec((tb, N, F), lambda b: (b, 0, 0)),   # feats tile
                pl.BlockSpec((tb, A), lambda b: (b, 0)),         # key path (precomputed)
                pl.BlockSpec((F, A), lambda b: (0, 0)),          # wv (resident)
                pl.BlockSpec((1, A), lambda b: (0, 0)),          # wa row (resident)
            ],
            out_specs=[
                pl.BlockSpec((tb, F), lambda b: (b, 0)),         # att_feats (lane-dense)
                pl.BlockSpec((tb, N), lambda b: (b, 0)),         # alpha (lane-dense)
            ],
        ),
        compiler_params=pltpu.CompilerParams(
            dimension_semantics=("parallel",)),                  # batch axis independent
    )(feats_p.astype(jnp.float32), h_p, wv.astype(jnp.float32), wa_row)

    return att[:B], alpha[:B]


def soft_attention_ref(feats, key, wh, bh, wv, bv, wa):
    v = feats @ wv + bv                                      # (B, N, A)
    h = (key @ wh + bh)[:, None, :]                          # (B, 1, A)
    scores = (jnp.tanh(v + h) @ wa)[..., 0]                  # (B, N)
    alpha = jax.nn.softmax(scores, axis=1)
    att = jnp.einsum("bn,bnf->bf", alpha, feats)
    return att, alpha


if __name__ == "__main__":
    B, N, FEAT, HID, ATT = 2, 8, 32, 32, 16

    key0 = jax.random.PRNGKey(0)
    k_feats, k_key, k1, k2, k3, k4, k5 = jax.random.split(key0, 7)

    feats = jax.random.normal(k_feats, (B, N, FEAT), dtype=jnp.float32)
    key_in = jax.random.normal(k_key, (B, HID), dtype=jnp.float32)

    # "Linear" parameters stored as (in, out) for x @ W.
    wh = jax.random.normal(k1, (HID, ATT), dtype=jnp.float32) / jnp.sqrt(HID)
    bh = jax.random.normal(k2, (ATT,), dtype=jnp.float32) * 0.1
    wv = jax.random.normal(k3, (FEAT, ATT), dtype=jnp.float32) / jnp.sqrt(FEAT)
    bv = jax.random.normal(k4, (ATT,), dtype=jnp.float32) * 0.1
    wa = jax.random.normal(k5, (ATT, 1), dtype=jnp.float32) / jnp.sqrt(ATT)

    att, alpha = soft_attention(feats, key_in, wh, bh, wv, bv, wa)
    att, alpha = jax.block_until_ready((att, alpha))

    att_r, alpha_r = soft_attention_ref(feats, key_in, wh, bh, wv, bv, wa)
    assert att.shape == (B, FEAT) and alpha.shape == (B, N)
    assert jnp.allclose(att, att_r, atol=1e-5, rtol=1e-5)
    assert jnp.allclose(alpha, alpha_r, atol=1e-5, rtol=1e-5)

    print("KERNEL_OK")
</pallas_src>

<mosaic_0001>
module attributes {stable_mosaic.version = 11 : i64} {
  func.func @soft_attention_kernel(%arg0: i32, %arg1: memref<8x8x32xf32, #tpu.memory_space<vmem>>, %arg2: memref<8x16xf32, #tpu.memory_space<vmem>>, %arg3: memref<32x16xf32, #tpu.memory_space<vmem>>, %arg4: memref<1x16xf32, #tpu.memory_space<vmem>>, %arg5: memref<8x32xf32, #tpu.memory_space<vmem>>, %arg6: memref<8x8xf32, #tpu.memory_space<vmem>>) attributes {dimension_semantics = [#tpu.dimension_semantics<parallel>], iteration_bounds = array<i64: 1>, scalar_prefetch = 0 : i64, scratch_operands = 0 : i64, tpu.core_type = #tpu.core_type<tc>, window_params = [{transform_indices = @transform_0, window_bounds = array<i64: 8, 8, 32>}, {transform_indices = @transform_1, window_bounds = array<i64: 8, 16>}, {pipeline_mode = #tpu.pipeline_mode<synchronous>, transform_indices = @transform_2, window_bounds = array<i64: 32, 16>}, {pipeline_mode = #tpu.pipeline_mode<synchronous>, transform_indices = @transform_3, window_bounds = array<i64: 1, 16>}, {transform_indices = @transform_4, window_bounds = array<i64: 8, 32>}, {transform_indices = @transform_5, window_bounds = array<i64: 8, 8>}]} {
    %c0 = arith.constant 0 : index
    %c0_0 = arith.constant 0 : index
    %c0_1 = arith.constant 0 : index
    %0 = vector.load %arg1[%c0, %c0_0, %c0_1] : memref<8x8x32xf32, #tpu.memory_space<vmem>>, vector<8x8x32xf32>
    %1 = vector.shape_cast %0 : vector<8x8x32xf32> to vector<64x32xf32>
    %c0_2 = arith.constant 0 : index
    %c0_3 = arith.constant 0 : index
    %2 = vector.load %arg3[%c0_2, %c0_3] : memref<32x16xf32, #tpu.memory_space<vmem>>, vector<32x16xf32>
    %cst = arith.constant dense<0.000000e+00> : vector<64x16xf32>
    %3 = tpu.matmul %1, %2, %cst {dimension_numbers = #tpu.dot_dimension_numbers<[1], [0], [0], [1], [0, 0, 1, 1], [], []>} : vector<64x32xf32>, vector<32x16xf32>, vector<64x16xf32> -> vector<64x16xf32>
    %4 = vector.shape_cast %3 : vector<64x16xf32> to vector<8x8x16xf32>
    %c0_4 = arith.constant 0 : index
    %c0_5 = arith.constant 0 : index
    %5 = vector.load %arg2[%c0_4, %c0_5] : memref<8x16xf32, #tpu.memory_space<vmem>>, vector<8x16xf32>
    %6 = vector.shape_cast %5 : vector<8x16xf32> to vector<8x1x16xf32>
    %7 = vector.broadcast %6 : vector<8x1x16xf32> to vector<8x8x16xf32>
    %8 = arith.addf %4, %7 : vector<8x8x16xf32>
    %9 = math.tanh %8 : vector<8x8x16xf32>
    %c0_6 = arith.constant 0 : index
    %c0_7 = arith.constant 0 : index
    %10 = vector.load %arg4[%c0_6, %c0_7] : memref<1x16xf32, #tpu.memory_space<vmem>>, vector<1x16xf32>
    %11 = vector.shape_cast %10 : vector<1x16xf32> to vector<1x1x16xf32>
    %12 = vector.broadcast %11 : vector<1x1x16xf32> to vector<8x8x16xf32>
    %13 = arith.mulf %9, %12 : vector<8x8x16xf32>
    %cst_8 = arith.constant dense<0.000000e+00> : vector<8x8xf32>
    %14 = vector.multi_reduction <add>, %13, %cst_8 [2] : vector<8x8x16xf32> to vector<8x8xf32>
    %cst_9 = arith.constant dense<0xFF800000> : vector<8xf32>
    %15 = vector.multi_reduction <maximumf>, %14, %cst_9 [1] : vector<8x8xf32> to vector<8xf32>
    %16 = vector.shape_cast %15 : vector<8xf32> to vector<8x1xf32>
    %17 = vector.broadcast %16 : vector<8x1xf32> to vector<8x8xf32>
    %18 = arith.subf %14, %17 : vector<8x8xf32>
    %19 = math.exp %18 : vector<8x8xf32>
    %cst_10 = arith.constant dense<0.000000e+00> : vector<8xf32>
    %20 = vector.multi_reduction <add>, %19, %cst_10 [1] : vector<8x8xf32> to vector<8xf32>
    %21 = vector.shape_cast %20 : vector<8xf32> to vector<8x1xf32>
    %22 = tpu.reciprocal %21 : vector<8x1xf32> -> vector<8x1xf32>
    %23 = vector.broadcast %22 : vector<8x1xf32> to vector<8x8xf32>
    %24 = arith.mulf %19, %23 : vector<8x8xf32>
    %25 = vector.shape_cast %24 : vector<8x8xf32> to vector<8x8x1xf32>
    %26 = vector.broadcast %25 : vector<8x8x1xf32> to vector<8x8x32xf32>
    %27 = arith.mulf %26, %0 : vector<8x8x32xf32>
    %cst_11 = arith.constant dense<0.000000e+00> : vector<8x32xf32>
    %28 = vector.multi_reduction <add>, %27, %cst_11 [1] : vector<8x8x32xf32> to vector<8x32xf32>
    %c0_12 = arith.constant 0 : index
    %c0_13 = arith.constant 0 : index
    %29 = vector.load %arg5[%c0_12, %c0_13] : memref<8x32xf32, #tpu.memory_space<vmem>>, vector<8x32xf32>
    tpu.vector_store %arg5[%c0_12, %c0_13], %28 {strides = array<i32>} : memref<8x32xf32, #tpu.memory_space<vmem>>, vector<8x32xf32>,
    %c0_14 = arith.constant 0 : index
    %c0_15 = arith.constant 0 : index
    %30 = vector.load %arg6[%c0_14, %c0_15] : memref<8x8xf32, #tpu.memory_space<vmem>>, vector<8x8xf32>
    tpu.vector_store %arg6[%c0_14, %c0_15], %24 {strides = array<i32>} : memref<8x8xf32, #tpu.memory_space<vmem>>, vector<8x8xf32>,
    return
  }
  func.func @transform_0(%arg0: i32) -> (i32, i32, i32) {
    %c0_i32 = arith.constant 0 : i32
    %c0_i32_0 = arith.constant 0 : i32
    %c0_i32_1 = arith.constant 0 : i32
    return %arg0, %c0_i32, %c0_i32_0 : i32, i32, i32
  }
  func.func @transform_1(%arg0: i32) -> (i32, i32) {
    %c0_i32 = arith.constant 0 : i32
    %c0_i32_0 = arith.constant 0 : i32
    return %arg0, %c0_i32 : i32, i32
  }
  func.func @transform_2(%arg0: i32) -> (i32, i32) {
    %c0_i32 = arith.constant 0 : i32
    %c0_i32_0 = arith.constant 0 : i32
    %c0_i32_1 = arith.constant 0 : i32
    return %c0_i32, %c0_i32_0 : i32, i32
  }
  func.func @transform_3(%arg0: i32) -> (i32, i32) {
    %c0_i32 = arith.constant 0 : i32
    %c0_i32_0 = arith.constant 0 : i32
    %c0_i32_1 = arith.constant 0 : i32
    return %c0_i32, %c0_i32_0 : i32, i32
  }
  func.func @transform_4(%arg0: i32) -> (i32, i32) {
    %c0_i32 = arith.constant 0 : i32
    %c0_i32_0 = arith.constant 0 : i32
    return %arg0, %c0_i32 : i32, i32
  }
  func.func @transform_5(%arg0: i32) -> (i32, i32) {
    %c0_i32 = arith.constant 0 : i32
    %c0_i32_0 = arith.constant 0 : i32
    return %arg0, %c0_i32 : i32, i32
  }
}

</mosaic_0001>

<bundles_post_ra>
// kernel: tpu_custom_call.1
= control target key start
LH: loop header
LB: loop body
LE: loop exit
PB: predicated region body
PF: predicated region fallthrough
CT: control target
= control target key end

     0   :  { %11 = vsyncpa [#allocation3], 0  ;;  %s1194_s0 = inlined_call_operand.hbm [shape: f32[8,8,32], index: 0, kind: input, shape index: {}]   ;;  %s1195_s1 = inlined_call_operand.vmem [shape: f32[8,16], index: 1, kind: input, shape index: {}]   ;;  %s1196_s2 = inlined_call_operand.vmem [shape: f32[32,16], index: 2, kind: input, shape index: {}]   ;;  %s1197_s3 = inlined_call_operand.vmem [shape: f32[1,16], index: 3, kind: input, shape index: {}]   ;;  %s1198_s4 = inlined_call_operand.hbm [shape: f32[8,32], index: 4, kind: output, shape index: {0}]   ;;  %s1199_s5 = inlined_call_operand.hbm [shape: f32[8,8], index: 5, kind: output, shape index: {1}]  }
   0x1   :  { %12 = vsyncpa [#allocation4], 0 }
   0x2   :  { %13 = vsyncpa [#allocation7], 0  ;;  %s935_s18 = smov [#allocation2]   ;;  %s863_s22 = scalar_lea.hbm %s1194_s0, 1024 }
   0x3   :  { %s19_s19 = sshll.u32 %s935_s18, 4  ;;  %p864_p0 = scmp.ne.s32.totalorder %s1194_s0, %s863_s22  ;;  %s20_s19 = int_to_ptr.vmem [resolvable:$true] %s19_s19 }
   0x4   :  { %p867_p1 = scmp.lt.u32.totalorder %s863_s22, %s1194_s0 }
   0x6   :  { %p869_p2 = pnand %p867_p1, %p864_p0 }
   0x8   :  { %872 = shalt.err (!%p869_p2)
}
   0x9   :  { %s873_s27 = scalar_lea.vmem %s20_s19, 1024  ;;  %p878_p4 = scmp.lt.s32.totalorder %s20_s19, %s20_s19 }
   0xa   :  { %p874_p3 = scmp.ne.s32.totalorder %s20_s19, %s873_s27  ;;  %p879_p5 = scmp.lt.s32.totalorder %s873_s27, %s873_s27 }
   0xc   :  { %p880_p6 = por %p879_p5, %p878_p4 }
   0xe   :  { %p881_p7 = pnand %p880_p6, %p874_p3 }
  0x10   :  { %884 = shalt.err (!%p881_p7)
}
  0x11   :  { %s936_s28 = smov 128   ;;  %s937_s29 = smov 8  }
  0x12   :  { %25 = dma.hbm_to_vmem [thread:$0]  %s1194_s0, 1024, %s20_s19, [#allocation3], %s936_s28, %s936_s28, %s937_s29  }
  0x13   :  { %929 = dma.done.wait [#allocation3], 1024  }
  0x14   :  { %930 = vsyncadd [#allocation3], 4294966272  ;;  %vm47_vm0 = vcmask 261120   ;;  %v43_v0 = vld [vmem:[%s1196_s2] sm:$0xff]  ;;  %v44_v1 = vld [vmem:[%s1196_s2 + $0x8] sm:$0xff]  ;;  %v183_v16 = vlaneseq  ;;  %vm299_vm1 = vcmask 130048  }
  0x15   :  { %v45_v2 = vld [vmem:[%s1196_s2 + $0x10] sm:$0xff]  ;;  %v807_v3 = vpack.c.bf16 %v44_v1, %v43_v0  ;;  %v46_v4 = vld [vmem:[%s1196_s2 + $0x18] sm:$0xff]  ;;  %v996_v5 = vld [vmem:[#allocation2] sm:$0xff]  ;;  %v938_v14 = vmov 1966171168   ;;  %vm366_vm2 = vcmask 1041409  }
  0x16   :  { %v811_v6 = vpack.c.bf16 %v46_v4, %v45_v2  ;;  %795 = vmatprep.mubr.msk.f32.mxu0 %vm47_vm0, %v996_v5  ;;  %v1000_v7 = vld [vmem:[#allocation2 + $0x20] sm:$0xff]  ;;  %v1004_v8 = vld [vmem:[#allocation2 + $0x8] sm:$0xff]  ;;  %v1008_v10 = vld [vmem:[#allocation2 + $0x10] sm:$0xff]  ;;  %v181_v15 = vunpack.c.l.s4 %v938_v14  ;;  %v1029_v18 = vshrl.u32 %v183_v16, 7  ;;  %vm368_vm3 = vcmask 1042434  }
  0x17   :  { %808 = vmatprep.subr.bf16.mxu0 %v807_v3  ;;  %815 = vmatprep.subr.bf16.mxu1 %v807_v3  ;;  %v1006_v9 = vld [vmem:[#allocation2 + $0x28] sm:$0xff]  ;;  %v1010_v11 = vld [vmem:[#allocation2 + $0x30] sm:$0xff]  ;;  %v1018_v12 = vld [vmem:[#allocation2 + $0x18] sm:$0xff]  ;;  %vm370_vm4 = vcmask 1043459   ;;  %vm372_vm5 = vcmask 1044484   ;;  %vm374_vm6 = vcmask 1045509  }
  0x18   :  { %810 = vmatpush3.bf16.msra.mxu0 %v807_v3  ;;  %817 = vmatpush3.bf16.msra.mxu1 %v807_v3  ;;  %v1022_v13 = vld [vmem:[#allocation2 + $0x38] sm:$0xff]  ;;  %v182_v17 = vunpack.c.0.s8 %v181_v15  ;;  %v177_v20 = vld [vmem:[%s1195_s1] sm:$0xff]  ;;  %v1036_v26 = vsub.s32 0, %v1029_v18  ;;  %vm376_vm7 = vcmask 1046534   ;;  %vm378_vm8 = vcmask 1047559  }
  0x19   :  { %812 = vmatprep.subr.bf16.mxu0 %v811_v6  ;;  %816 = vmatprep.subr.bf16.mxu1 %v811_v6  ;;  %v179_v22 = vcombine.high %v177_v20, %v177_v20  ;;  %v774_v59 = vld [vmem:[%s1197_s3] ss:$0 sm:$0xff]  ;;  %vm381_vm9 = vcmask 64512   ;;  %s940_s3 = smov [#allocation6]  }
  0x1a   :  { %801 = vmatprep.mubr.msk.f32.mxu1 %vm47_vm0, %v1000_v7  ;;  %v185_v19 = vsub.s32 %v182_v17, %v1029_v18  ;;  %s753_s16 = sshll.u32 %s940_s3, 4  ;;  %s754_s16 = int_to_ptr.vmem [resolvable:$true] %s753_s16 }
  0x1b   :  { %s885_s17 = scalar_lea.vmem %s754_s16, 128  ;;  %p890_p9 = scmp.lt.s32.totalorder %s754_s16, %s754_s16 }
  0x1c   :  { %814 = vmatpush3.bf16.msra.mxu0 %v811_v6  ;;  %818 = vmatpush3.bf16.msra.mxu1 %v811_v6  ;;  %v186_v21 = vrot.slane %v177_v20, %v185_v19  ;;  %v193_v24 = vrot.slane %v179_v22, %v185_v19  ;;  %p886_p8 = scmp.ne.s32.totalorder %s754_s16, %s885_s17  ;;  %p891_p10 = scmp.lt.s32.totalorder %s885_s17, %s885_s17 }
  0x1e   :  { %v194_v23 = vcombine.high %v186_v21, %v186_v21  ;;  %v202_v27 = vrot.slane %v186_v21, %v185_v19  ;;  %v209_v28 = vrot.slane %v193_v24, %v185_v19  ;;  %v195_v29 = vcombine.high %v193_v24, %v193_v24  ;;  %p892_p11 = por %p891_p10, %p890_p9 }
  0x1f   :  { %796 = vmatmul.mubr.msk.f32.vlgmr.msra.gmra.mrb[0].mxu0 %vm47_vm0, %v1004_v8  ;;  %802 = vmatmul.mubr.msk.f32.vlgmr.msra.gmra.mrb[0].mxu1 %vm47_vm0, %v1006_v9 }
  0x20   :  { %798 = vmatprep.mubr.msk.f32.mxu0 %vm47_vm0, %v1008_v10  ;;  %804 = vmatprep.mubr.msk.f32.mxu1 %vm47_vm0, %v1010_v11  ;;  %v216_v25 = vrot.slane %v194_v23, %v185_v19  ;;  %v231_v32 = vrot.slane %v202_v27, %v1036_v26  ;;  %v224_v33 = vcombine.high %v202_v27, %v202_v27  ;;  %p893_p12 = pnand %p892_p11, %p886_p8 }
  0x21   :  { %v247_v34 = vrot.slane %v209_v28, %v1036_v26  ;;  %v225_v35 = vcombine.high %v209_v28, %v209_v28  ;;  %v223_v36 = vrot.slane %v195_v29, %v185_v19 }
  0x22   :  { %v235_v30 = vrot.slane %v216_v25, %v1036_v26  ;;  %v226_v31 = vcombine.high %v216_v25, %v216_v25  ;;  %v239_v44 = vrot.slane %v224_v33, %v1036_v26 }
  0x23   :  { %799 = vmatmul.mubr.msk.f32.gmra.mrb[2].mxu0 %vm47_vm0, %v1018_v12  ;;  %805 = vmatmul.mubr.msk.f32.gmra.mrb[2].mxu1 %vm47_vm0, %v1022_v13  ;;  %v255_v46 = vrot.slane %v225_v35, %v1036_v26  ;;  %v251_v47 = vrot.slane %v223_v36, %v1036_v26  ;;  %v227_v48 = vcombine.high %v223_v36, %v223_v36 }
  0x24   :  { %v243_v41 = vrot.slane %v226_v31, %v1036_v26  ;;  %v333_v31 = vand.u32 127, %v183_v16 }
  0x25   :  { %v259_v57 = vrot.slane %v227_v48, %v1036_v26 }
  0x26   :  { %v1059_v33 = vsub.s32 %v333_v31, %v1029_v18 }
  0xf2   :  { %v797_v37 = vpop.f32.mrb[0].mxu0  ;;  %v803_v38 = vpop.f32.mrb[0].mxu1 }
  0xf3   :  { %v269_v39 = vadd.f32 %v797_v37, %v235_v30  ;;  %v138_v40 = vpop.f32.mrb[1].mxu0  ;;  %v158_v42 = vpop.f32.mrb[1].mxu1  ;;  %v273_v56 = vadd.f32 %v803_v38, %v251_v47 }
  0xf4   :  { %v268_v43 = vadd.f32 %v231_v32, %v138_v40  ;;  %v272_v45 = vadd.f32 %v247_v34, %v158_v42 }
  0xf5   :  { %829 = vtanh.f32 %v269_v39 }
  0xf6   :  { %831 = vtanh.f32 %v268_v43  ;;  %v800_v49 = vpop.f32.mrb[2].mxu0  ;;  %v806_v50 = vpop.f32.mrb[2].mxu1 }
  0xf7   :  { %v271_v51 = vadd.f32 %v800_v49, %v243_v41  ;;  %v148_v52 = vpop.f32.mrb[3].mxu0  ;;  %v168_v53 = vpop.f32.mrb[3].mxu1  ;;  %833 = vtanh.f32 %v272_v45  ;;  %v275_v58 = vadd.f32 %v806_v50, %v259_v57  ;;  %v392_v57 = vsub.s32 1, %v1029_v18 }
  0xf8   :  { %v270_v54 = vadd.f32 %v239_v44, %v148_v52  ;;  %v274_v55 = vadd.f32 %v255_v46, %v168_v53 }
  0xf9   :  { %835 = vtanh.f32 %v271_v51 }
  0xfa   :  { %837 = vtanh.f32 %v270_v54 }
  0xfb   :  { %839 = vtanh.f32 %v274_v55 }
  0xfc   :  { %841 = vtanh.f32 %v273_v56  ;;  %v939_v56 = vmov 0  }
  0xfd   :  { %843 = vtanh.f32 %v275_v58  ;;  %827 = vset.pattern.permute.xlu0 %v939_v56  ;;  %826 = vset.pattern.permute.xlu1 %v939_v56  ;;  %v396_v58 = vsub.s32 2, %v1029_v18 }
  0xff   :  { %v830_v60 = vpop.eup %829 }
 0x100   :  { %v832_v61 = vpop.eup %831  ;;  %v292_v62 = vmul.f32 %v830_v60, %v774_v59 }
 0x101   :  { %v834_v63 = vpop.eup %833  ;;  %v291_v1 = vmul.f32 %v832_v61, %v774_v59 }
 0x102   :  { %v303_v0 = vsel %vm299_vm1, %v292_v62, 0.0  ;;  %v295_v6 = vmul.f32 %v834_v63, %v774_v59 }
 0x103   :  { %v836_v2 = vpop.eup %835  ;;  %304 = vadd.xlane.f32.xlu0 %v303_v0  ;;  %v300_v15 = vsel %vm299_vm1, %v291_v1, 0.0  ;;  %v404_v0 = vsub.s32 4, %v1029_v18 }
 0x104   :  { %v838_v3 = vpop.eup %837  ;;  %v294_v4 = vmul.f32 %v836_v2, %v774_v59  ;;  %v312_v21 = vsel %vm299_vm1, %v295_v6, 0.0 }
 0x105   :  { %v840_v14 = vpop.eup %839  ;;  %v293_v19 = vmul.f32 %v838_v3, %v774_v59 }
 0x106   :  { %v309_v17 = vsel %vm299_vm1, %v294_v4, 0.0  ;;  %v842_v20 = vpop.eup %841  ;;  %v297_v22 = vmul.f32 %v840_v14, %v774_v59 }
 0x107   :  { %301 = vadd.xlane.f32.xlu0 %v300_v15  ;;  %310 = vadd.xlane.f32.xlu1 %v309_v17  ;;  %v306_v23 = vsel %vm299_vm1, %v293_v19, 0.0  ;;  %v296_v24 = vmul.f32 %v842_v20, %v774_v59  ;;  %v844_v25 = vpop.eup %843  ;;  %v408_v15 = vsub.s32 5, %v1029_v18 }
 0x108   :  { %v318_v27 = vsel %vm299_vm1, %v297_v22, 0.0  ;;  %v298_v29 = vmul.f32 %v844_v25, %v774_v59  ;;  %v400_v59 = vsub.s32 3, %v1029_v18  ;;  %v416_v25 = vsub.s32 7, %v1029_v18 }
 0x109   :  { %v315_v28 = vsel %vm299_vm1, %v296_v24, 0.0 }
 0x10a   :  { %v321_v30 = vsel %vm299_vm1, %v298_v29, 0.0 }
 0x10b   :  { %307 = vadd.xlane.f32.xlu1 %v306_v23  ;;  %313 = vadd.xlane.f32.xlu0 %v312_v21  ;;  %v412_v21 = vsub.s32 6, %v1029_v18 }
 0x10f   :  { %316 = vadd.xlane.f32.xlu1 %v315_v28  ;;  %319 = vadd.xlane.f32.xlu0 %v318_v27 }
 0x113   :  { %322 = vadd.xlane.f32.xlu1 %v321_v30 }
 0x190   :  { %v305_v32 = vpop.xlane.xlu0 %304 }
 0x191   :  { %v341_v37 = vrot.slane %v305_v32, %v1059_v33 }
 0x194   :  { %v302_v34 = vpop.xlane.xlu0 %301  ;;  %v311_v35 = vpop.xlane.xlu1 %310 }
 0x195   :  { %v337_v36 = vrot.slane %v302_v34, %v1059_v33  ;;  %v349_v42 = vrot.slane %v311_v35, %v1059_v33 }
 0x197   :  { %v367_v16 = vsel %vm366_vm2, %v341_v37, %v337_v36 }
 0x198   :  { %v308_v38 = vpop.xlane.xlu1 %307  ;;  %v314_v39 = vpop.xlane.xlu0 %313 }
 0x199   :  { %v345_v40 = vrot.slane %v308_v38, %v1059_v33  ;;  %v353_v41 = vrot.slane %v314_v39, %v1059_v33 }
 0x19b   :  { %v369_v43 = vsel %vm368_vm3, %v345_v40, %v367_v16 }
 0x19c   :  { %v371_v44 = vsel %vm370_vm4, %v349_v42, %v369_v43  ;;  %v317_v45 = vpop.xlane.xlu1 %316  ;;  %v320_v46 = vpop.xlane.xlu0 %319 }
 0x19d   :  { %v373_v47 = vsel %vm372_vm5, %v353_v41, %v371_v44  ;;  %v357_v48 = vrot.slane %v317_v45, %v1059_v33  ;;  %v361_v49 = vrot.slane %v320_v46, %v1059_v33 }
 0x19f   :  { %v375_v50 = vsel %vm374_vm6, %v357_v48, %v373_v47 }
 0x1a0   :  { %v323_v51 = vpop.xlane.xlu1 %322  ;;  %v377_v53 = vsel %vm376_vm7, %v361_v49, %v375_v50 }
 0x1a1   :  { %v365_v52 = vrot.slane %v323_v51, %v1059_v33 }
 0x1a3   :  { %v379_v54 = vsel %vm378_vm8, %v365_v52, %v377_v53 }
 0x1a4   :  { %v382_v55 = vsel %vm381_vm9, %v379_v54, -inf }
 0x1a5   :  { %383 = vmax.xlane.f32.xlu0 %v382_v55 }
 0x232   :  { %v384_v60 = vpop.xlane.xlu0 %383 }
 0x233   :  { %v389_v61 = vrot.slane %v384_v60, %v1036_v26  ;;  %v393_v62 = vrot.slane %v384_v60, %v392_v57  ;;  %v397_v63 = vrot.slane %v384_v60, %v396_v58  ;;  %v401_v1 = vrot.slane %v384_v60, %v400_v59 }
 0x234   :  { %v405_v17 = vrot.slane %v384_v60, %v404_v0  ;;  %v409_v22 = vrot.slane %v384_v60, %v408_v15  ;;  %v413_v27 = vrot.slane %v384_v60, %v412_v21 }
 0x235   :  { %v426_v2 = vsub.f32 %v302_v34, %v389_v61  ;;  %v427_v3 = vsub.f32 %v305_v32, %v393_v62  ;;  %v428_v4 = vsub.f32 %v308_v38, %v397_v63  ;;  %v429_v19 = vsub.f32 %v311_v35, %v401_v1 }
 0x236   :  { %v430_v23 = vsub.f32 %v314_v39, %v405_v17  ;;  %v431_v28 = vsub.f32 %v317_v45, %v409_v22  ;;  %v417_v32 = vrot.slane %v384_v60, %v416_v25  ;;  %v432_v34 = vsub.f32 %v320_v46, %v413_v27 }
 0x237   :  { %v434_v6 = vmul.f32 1.442695, %v426_v2  ;;  %v436_v14 = vmul.f32 1.442695, %v427_v3  ;;  %v438_v20 = vmul.f32 1.442695, %v428_v4 }
 0x238   :  { %v440_v24 = vmul.f32 1.442695, %v429_v19  ;;  %v442_v29 = vmul.f32 1.442695, %v430_v23  ;;  %v444_v35 = vmul.f32 1.442695, %v431_v28  ;;  %v433_v37 = vsub.f32 %v323_v51, %v417_v32 }
 0x239   :  { %845 = vpow2.f32 %v434_v6  ;;  %v446_v38 = vmul.f32 1.442695, %v432_v34 }
 0x23a   :  { %847 = vpow2.f32 %v436_v14  ;;  %v448_v40 = vmul.f32 1.442695, %v433_v37 }
 0x23b   :  { %849 = vpow2.f32 %v438_v20 }
 0x23c   :  { %851 = vpow2.f32 %v440_v24 }
 0x23d   :  { %853 = vpow2.f32 %v442_v29 }
 0x23e   :  { %855 = vpow2.f32 %v444_v35 }
 0x23f   :  { %857 = vpow2.f32 %v446_v38 }
 0x240   :  { %859 = vpow2.f32 %v448_v40 }
 0x243   :  { %v846_v30 = vpop.eup %845 }
 0x244   :  { %v848_v31 = vpop.eup %847  ;;  %459 = vperm.xlu1 %826, %v846_v30  }
 0x245   :  { %462 = vperm.xlu0 %827, %v848_v31   ;;  %v850_v36 = vpop.eup %849 }
 0x246   :  { %v852_v39 = vpop.eup %851 }
 0x247   :  { %v854_v41 = vpop.eup %853 }
 0x248   :  { %465 = vperm.xlu1 %826, %v850_v36   ;;  %v856_v16 = vpop.eup %855 }
 0x249   :  { %v858_v42 = vpop.eup %857 }
 0x24a   :  { %v860_v43 = vpop.eup %859 }
 0x24c   :  { %468 = vperm.xlu1 %826, %v852_v39  }
 0x250   :  { %471 = vperm.xlu1 %826, %v854_v41  }
 0x254   :  { %474 = vperm.xlu1 %826, %v856_v16  }
 0x258   :  { %477 = vperm.xlu1 %826, %v858_v42  }
 0x25c   :  { %480 = vperm.xlu1 %826, %v860_v43  }
 0x2c3   :  { %v460_v44 = vpop.permute.xlu1 %459 }
 0x2c4   :  { %v463_v48 = vpop.permute.xlu0 %462  ;;  %v485_v51 = vrot.slane %v460_v44, %v1059_v33 }
 0x2c5   :  { %v489_v50 = vrot.slane %v463_v48, %v1059_v33 }
 0x2c7   :  { %v466_v45 = vpop.permute.xlu1 %465  ;;  %v514_v56 = vsel %vm366_vm2, %v489_v50, %v485_v51 }
 0x2c8   :  { %v493_v52 = vrot.slane %v466_v45, %v1059_v33 }
 0x2ca   :  { %v515_v61 = vsel %vm368_vm3, %v493_v52, %v514_v56 }
 0x2cb   :  { %v469_v46 = vpop.permute.xlu1 %468 }
 0x2cc   :  { %v497_v53 = vrot.slane %v469_v46, %v1059_v33 }
 0x2ce   :  { %v516_v63 = vsel %vm370_vm4, %v497_v53, %v515_v61 }
 0x2cf   :  { %v472_v47 = vpop.permute.xlu1 %471 }
 0x2d0   :  { %v501_v54 = vrot.slane %v472_v47, %v1059_v33 }
 0x2d2   :  { %v517_v1 = vsel %vm372_vm5, %v501_v54, %v516_v63 }
 0x2d3   :  { %v475_v49 = vpop.permute.xlu1 %474 }
 0x2d4   :  { %v505_v60 = vrot.slane %v475_v49, %v1059_v33 }
 0x2d6   :  { %v518_v3 = vsel %vm374_vm6, %v505_v60, %v517_v1 }
 0x2d7   :  { %v478_v55 = vpop.permute.xlu1 %477 }
 0x2d8   :  { %v509_v62 = vrot.slane %v478_v55, %v1059_v33 }
 0x2da   :  { %v519_v6 = vsel %vm376_vm7, %v509_v62, %v518_v3 }
 0x2db   :  { %v481_v2 = vpop.permute.xlu1 %480 }
 0x2dc   :  { %v513_v4 = vrot.slane %v481_v2, %v1059_v33 }
 0x2de   :  { %v520_v14 = vsel %vm378_vm8, %v513_v4, %v519_v6 }
 0x2df   :  { %v522_v17 = vsel %vm381_vm9, %v520_v14, 0.0 }
 0x2e0   :  { %523 = vadd.xlane.f32.xlu1 %v522_v17 }
 0x36d   :  { %v524_v19 = vpop.xlane.xlu1 %523 }
 0x36e   :  { %861 = vrcp.f32 %v524_v19 }
 0x378   :  { %v862_v20 = vpop.eup %861 }
 0x379   :  { %v530_v22 = vrot.slane %v862_v20, %v1036_v26  ;;  %v534_v24 = vrot.slane %v862_v20, %v392_v57  ;;  %v538_v28 = vrot.slane %v862_v20, %v396_v58  ;;  %v542_v32 = vrot.slane %v862_v20, %v400_v59 }
 0x37a   :  { %v546_v35 = vrot.slane %v862_v20, %v404_v0  ;;  %v550_v57 = vrot.slane %v862_v20, %v408_v15  ;;  %v554_v58 = vrot.slane %v862_v20, %v412_v21  ;;  %v558_v59 = vrot.slane %v862_v20, %v416_v25 }
 0x37b   :  { %v567_v23 = vmul.f32 %v846_v30, %v530_v22  ;;  %v568_v27 = vmul.f32 %v848_v31, %v534_v24  ;;  %v569_v29 = vmul.f32 %v850_v36, %v538_v28  ;;  %v570_v34 = vmul.f32 %v852_v39, %v542_v32 }
 0x37c   :  { %v571_v26 = vmul.f32 %v854_v41, %v546_v35  ;;  %v572_v30 = vmul.f32 %v856_v16, %v550_v57  ;;  %v573_v31 = vmul.f32 %v858_v42, %v554_v58  ;;  %v574_v36 = vmul.f32 %v860_v43, %v558_v59 }
 0x37d   :  { %577 = vperm.xlu0 %827, %v567_v23  }
 0x381   :  { %582 = vperm.xlu0 %827, %v568_v27  }
 0x385   :  { %587 = vperm.xlu0 %827, %v569_v29  }
 0x389   :  { %592 = vperm.xlu0 %827, %v570_v34  }
 0x38d   :  { %597 = vperm.xlu0 %827, %v571_v26  }
 0x391   :  { %602 = vperm.xlu0 %827, %v572_v30  }
 0x395   :  { %607 = vperm.xlu0 %827, %v573_v31  }
 0x399   :  { %612 = vperm.xlu0 %827, %v574_v36  }
 0x3fc   :  { %v578_v37 = vpop.permute.xlu0 %577 }
 0x3fd   :  { %v615_v39 = vmul.f32 %v578_v37, %v996_v5  ;;  %v699_v54 = vrot.slane %v578_v37, %v1059_v33 }
 0x3ff   :  { %v623_v21 = vsel %vm47_vm0, %v615_v39, 0.0 }
 0x400   :  { %v583_v0 = vpop.permute.xlu0 %582  ;;  %v624_v43 = vrot.slane %v623_v21, 4 }
 0x401   :  { %v616_v38 = vmul.f32 %v583_v0, %v1004_v8  ;;  %v703_v53 = vrot.slane %v583_v0, %v1059_v33 }
 0x403   :  { %v630_v41 = vsel %vm47_vm0, %v616_v38, 0.0  ;;  %v728_v6 = vsel %vm366_vm2, %v703_v53, %v699_v54 }
 0x404   :  { %v588_v15 = vpop.permute.xlu0 %587  ;;  %v631_v42 = vrot.slane %v630_v41, 4 }
 0x405   :  { %v617_v40 = vmul.f32 %v588_v15, %v1008_v10  ;;  %v625_v10 = vadd.f32 %v624_v43, %v623_v21  ;;  %v707_v56 = vrot.slane %v588_v15, %v1059_v33 }
 0x406   :  { %v632_v47 = vadd.f32 %v631_v42, %v630_v41 }
 0x407   :  { %v637_v16 = vsel %vm47_vm0, %v617_v40, 0.0  ;;  %v626_v61 = vrot.slane %v625_v10, 2  ;;  %v729_v20 = vsel %vm368_vm3, %v707_v56, %v728_v6 }
 0x408   :  { %v593_v18 = vpop.permute.xlu0 %592  ;;  %v638_v44 = vrot.slane %v637_v16, 4  ;;  %v633_v55 = vrot.slane %v632_v47, 2 }
 0x409   :  { %v618_v25 = vmul.f32 %v593_v18, %v1018_v12  ;;  %v711_v62 = vrot.slane %v593_v18, %v1059_v33  ;;  %v627_v24 = vadd.f32 %v626_v61, %v625_v10 }
 0x40a   :  { %v639_v48 = vadd.f32 %v638_v44, %v637_v16  ;;  %v634_v19 = vadd.f32 %v633_v55, %v632_v47 }
 0x40b   :  { %v644_v45 = vsel %vm47_vm0, %v618_v25, 0.0  ;;  %v730_v28 = vsel %vm370_vm4, %v711_v62, %v729_v20  ;;  %v628_v40 = vrot.slane %v627_v24, 1 }
 0x40c   :  { %v645_v8 = vrot.slane %v644_v45, 4  ;;  %v598_v46 = vpop.permute.xlu0 %597  ;;  %v635_v59 = vrot.slane %v634_v19, 1 }
 0x40d   :  { %v619_v5 = vmul.f32 %v598_v46, %v1000_v7  ;;  %v640_v7 = vrot.slane %v639_v48, 2  ;;  %v715_v2 = vrot.slane %v598_v46, %v1059_v33 }
 0x40e   :  { %v646_v50 = vadd.f32 %v645_v8, %v644_v45 }
 0x40f   :  { %v651_v49 = vsel %vm47_vm0, %v619_v5, 0.0  ;;  %v641_v27 = vadd.f32 %v640_v7, %v639_v48  ;;  %v731_v34 = vsel %vm372_vm5, %v715_v2, %v730_v28 }
 0x410   :  { %v652_v51 = vrot.slane %v651_v49, 4  ;;  %v603_v52 = vpop.permute.xlu0 %602  ;;  %v647_v1 = vrot.slane %v646_v50, 2 }
 0x411   :  { %v620_v12 = vmul.f32 %v603_v52, %v1006_v9  ;;  %v719_v14 = vrot.slane %v603_v52, %v1059_v33  ;;  %v642_v38 = vrot.slane %v641_v27, 1 }
 0x412   :  { %v653_v60 = vadd.f32 %v652_v51, %v651_v49  ;;  %v648_v32 = vadd.f32 %v647_v1, %v646_v50 }
 0x413   :  { %v658_v63 = vsel %vm47_vm0, %v620_v12, 0.0  ;;  %v732_v30 = vsel %vm374_vm6, %v719_v14, %v731_v34 }
 0x414   :  { %v659_v3 = vrot.slane %v658_v63, 4  ;;  %v608_v4 = vpop.permute.xlu0 %607  ;;  %v654_v9 = vrot.slane %v653_v60, 2  ;;  %v649_v41 = vrot.slane %v648_v32, 1 }
 0x415   :  { %v621_v17 = vmul.f32 %v608_v4, %v1010_v11  ;;  %v723_v23 = vrot.slane %v608_v4, %v1059_v33 }
 0x416   :  { %v660_v22 = vadd.f32 %v659_v3, %v658_v63  ;;  %v655_v57 = vadd.f32 %v654_v9, %v653_v60 }
 0x417   :  { %v665_v29 = vsel %vm47_vm0, %v621_v17, 0.0  ;;  %v733_v0 = vsel %vm376_vm7, %v723_v23, %v732_v30 }
 0x418   :  { %v661_v35 = vrot.slane %v660_v22, 2  ;;  %v666_v26 = vrot.slane %v665_v29, 4  ;;  %v613_v11 = vpop.permute.xlu0 %612 }
 0x419   :  { %v622_v58 = vmul.f32 %v613_v11, %v1022_v13  ;;  %v727_v31 = vrot.slane %v613_v11, %v1059_v33  ;;  %v656_v13 = vrot.slane %v655_v57, 1 }
 0x41a   :  { %v662_v36 = vadd.f32 %v661_v35, %v660_v22  ;;  %v667_v37 = vadd.f32 %v666_v26, %v665_v29 }
 0x41b   :  { %v672_v39 = vsel %vm47_vm0, %v622_v58, 0.0  ;;  %v734_v15 = vsel %vm378_vm8, %v727_v31, %v733_v0 }
 0x41c   :  { %v668_v21 = vrot.slane %v667_v37, 2  ;;  %v673_v16 = vrot.slane %v672_v39, 4  ;;  %736 = vst.msk [vmem:[#allocation6] sm:$0xff] %vm381_vm9, %v734_v15 }
 0x41d   :  { %896 = shalt.err (!%p893_p12)
}
 0x41e   :  { %s897_s20 = scalar_lea.hbm %s1199_s5, 128 }
 0x41f   :  { %p898_p13 = scmp.ne.s32.totalorder %s1199_s5, %s897_s20  ;;  %p901_p0 = scmp.lt.u32.totalorder %s897_s20, %s1199_s5 }
 0x421   :  { %p903_p1 = pnand %p901_p0, %p898_p13 }
 0x423   :  { %906 = shalt.err (!%p903_p1)
}
 0x424   :  { %756 = dma.vmem_to_hbm [thread:$0]  %s754_s16, 128, %s1199_s5, [#allocation7]   ;;  %v636_v33 = vadd.f32 %v635_v59, %v634_v19  ;;  %v663_v18 = vrot.slane %v662_v36, 1  ;;  %v669_v25 = vadd.f32 %v668_v21, %v667_v37  ;;  %v674_v42 = vadd.f32 %v673_v16, %v672_v39 }
 0x425   :  { %v643_v43 = vadd.f32 %v642_v38, %v641_v27  ;;  %v629_v44 = vadd.f32 %v628_v40, %v627_v24  ;;  %v650_v45 = vadd.f32 %v649_v41, %v648_v32  ;;  %v657_v5 = vadd.f32 %v656_v13, %v655_v57  ;;  %s941_s5 = smov [#allocation5]  }
 0x426   :  { %v670_v8 = vrot.slane %v669_v25, 1  ;;  %v675_v46 = vrot.slane %v674_v42, 2  ;;  %v664_v10 = vadd.f32 %v663_v18, %v662_v36  ;;  %s743_s27 = sshll.u32 %s941_s5, 4  ;;  %s744_s27 = int_to_ptr.vmem [resolvable:$true] %s743_s27 }
 0x427   :  { %v687_v47 = vsel %vm366_vm2, %v636_v33, %v629_v44  ;;  %s907_s28 = scalar_lea.vmem %s744_s27, 128  ;;  %p912_p3 = scmp.lt.s32.totalorder %s744_s27, %s744_s27 }
 0x428   :  { %v676_v48 = vadd.f32 %v675_v46, %v674_v42  ;;  %v688_v49 = vsel %vm368_vm3, %v643_v43, %v687_v47  ;;  %v671_v50 = vadd.f32 %v670_v8, %v669_v25  ;;  %p908_p2 = scmp.ne.s32.totalorder %s744_s27, %s907_s28  ;;  %p913_p4 = scmp.lt.s32.totalorder %s907_s28, %s907_s28 }
 0x429   :  { %v689_v52 = vsel %vm370_vm4, %v650_v45, %v688_v49 }
 0x42a   :  { %v677_v51 = vrot.slane %v676_v48, 1  ;;  %v690_v53 = vsel %vm372_vm5, %v657_v5, %v689_v52  ;;  %p914_p5 = por %p913_p4, %p912_p3 }
 0x42b   :  { %v691_v54 = vsel %vm374_vm6, %v664_v10, %v690_v53 }
 0x42c   :  { %v678_v12 = vadd.f32 %v677_v51, %v676_v48  ;;  %v692_v55 = vsel %vm376_vm7, %v671_v50, %v691_v54  ;;  %p915_p6 = pnand %p914_p5, %p908_p2 }
 0x42e   :  { %v693_v56 = vsel %vm378_vm8, %v678_v12, %v692_v55 }
 0x42f   :  { %695 = vst.msk [vmem:[#allocation5] sm:$0xff] %vm47_vm0, %v693_v56 }
 0x430   :  { %918 = shalt.err (!%p915_p6)
}
 0x431   :  { %s919_s6 = scalar_lea.hbm %s1198_s4, 128 }
 0x432   :  { %p920_p7 = scmp.ne.s32.totalorder %s1198_s4, %s919_s6  ;;  %p923_p8 = scmp.lt.u32.totalorder %s919_s6, %s1198_s4 }
 0x434   :  { %p925_p9 = pnand %p923_p8, %p920_p7 }
 0x436   :  { %928 = shalt.err (!%p925_p9)
}
 0x437   :  { %746 = dma.vmem_to_hbm [thread:$0]  %s744_s27, 128, %s1198_s4, [#allocation4]  }
 0x438   :  { %931 = dma.done.wait [#allocation4], 128  }
 0x439   :  { %932 = vsyncadd [#allocation4], 4294967168 }
 0x43a   :  { %933 = dma.done.wait [#allocation7], 128  }
 0x43b   :  { %934 = vsyncadd [#allocation7], 4294967168 }
 0x43c   :  { %763 = vsyncpa [#allocation3], 1 }
 0x43d   :  { %764 = vsyncpa [#allocation4], 1 }
 0x43e   :  { %765 = vsyncpa [#allocation7], 1 }

</bundles_post_ra>
